<compile_context>
chip_gen: v7x
topology: tpu7x:2x2x1
jax: 0.10.0
libtpu: 0.0.40
codegen_flags: <defaults>
</compile_context>

<pallas_src>
import jax
import jax.numpy as jnp
from jax import lax
from jax.experimental import pallas as pl
from jax.experimental.pallas import tpu as pltpu

EPS = 1e-5
C_IN = 3             # input channels
C_MAIN = 13          # conv-branch channels
C_OUT = 16           # conv + pool channels
K_PATCH = 9 * C_IN   # 27 im2col rows
PATCH_DTYPE = jnp.bfloat16   # HBM dtype of im2col patches (float32 -> exact)
MAX_TILE_HW = 16384          # lane tile upper bound (multiple of 128)


def _conv_pool(patches_ref, wmat_ref):
    """(27,T) patches + (13,27) weights -> (16,T) f32 [conv ; maxpool]."""
    main = jnp.dot(wmat_ref[...], patches_ref[...],
                   preferred_element_type=jnp.float32)               # (13,T)
    # 2x2/s2 max-pool == max over the conv taps (kh,kw) in {1,2}x{1,2},
    # i.e. patch row blocks 12:15, 15:18, 21:24, 24:27.  f32 VPU math.
    p11 = patches_ref[12:15, :].astype(jnp.float32)
    p12 = patches_ref[15:18, :].astype(jnp.float32)
    p21 = patches_ref[21:24, :].astype(jnp.float32)
    p22 = patches_ref[24:27, :].astype(jnp.float32)
    pool = jnp.maximum(jnp.maximum(p11, p12), jnp.maximum(p21, p22))  # (3,T)
    return jnp.concatenate([main, pool], axis=0)                     # (16,T)


def _pass1_kernel(patches_ref, wmat_ref, stats_ref):
    """Per-tile partial BN statistics.  stats_ref: (16,2) = [sum, sumsq]."""
    z = _conv_pool(patches_ref, wmat_ref)              # stays in registers
    s1 = jnp.sum(z, axis=1, keepdims=True)
    s2 = jnp.sum(z * z, axis=1, keepdims=True)
    stats_ref[...] = jnp.concatenate([s1, s2], axis=1)  # single store


def _pass2_kernel(patches_ref, wmat_ref, params_ref, out_ref):
    """Recompute conv+pool, folded BN (one FMA) + PReLU, one full store.
       params_ref: (16,3) = [scale, shift, prelu_slope]."""
    z = _conv_pool(patches_ref, wmat_ref)
    scale = params_ref[:, 0:1]
    shift = params_ref[:, 1:2]
    slope = params_ref[:, 2:3]
    y = z * scale + shift
    out_ref[...] = jnp.where(y >= 0.0, y, y * slope)


def _tile_plan(hw, max_tile=MAX_TILE_HW):
    """(tile_hw, num_tiles, padded_hw): tile is either the full extent or a
    multiple of 128, with hw zero-padded up to num_tiles * tile."""
    if hw <= max_tile:
        return hw, 1, hw
    num_t = -(-hw // max_tile)            # ceil
    per = -(-hw // num_t)                 # ceil(hw / num_t) <= max_tile
    tile = ((per + 127) // 128) * 128     # round up to lane-dense multiple
    return tile, num_t, num_t * tile


@jax.jit
def initial_block(x_nchw, conv_w, bn_gamma, bn_beta, prelu_w):
    """x_nchw: (N, 3, H, W) float32 -> (N, 16, H//2, W//2) float32."""
    N, Cin, H, W = x_nchw.shape
    assert Cin == C_IN and H % 2 == 0 and W % 2 == 0
    Ho, Wo = H // 2, W // 2
    HW = Ho * Wo
    tile_hw, num_t, hw_pad = _tile_plan(HW)

    x = x_nchw.astype(jnp.float32)
    # im2col for the 3x3/s2/p1 conv straight from NCHW (no layout transpose).
    # Rows ordered (kh,kw)-major, cin-minor.  Stored bf16 in HBM.
    xp = jnp.pad(x, ((0, 0), (0, 0), (1, 1), (1, 1)))
    cols = [xp[:, :, kh:kh + 2 * Ho:2, kw:kw + 2 * Wo:2]
            for kh in range(3) for kw in range(3)]
    patches = jnp.stack(cols, axis=1).reshape(N, K_PATCH, HW).astype(PATCH_DTYPE)
    if hw_pad != HW:
        patches = jnp.pad(patches, ((0, 0), (0, 0), (0, hw_pad - HW)))

    # conv weight (O,I,KH,KW) -> (O,KH,KW,I) -> (13,27), matching patch rows.
    wmat = jnp.transpose(conv_w, (0, 2, 3, 1)).reshape(C_MAIN, K_PATCH)
    wmat = wmat.astype(PATCH_DTYPE)

    # ---- pass 1: conv + pool -> per-tile partial BN stats (no pre-BN HBM) ---
    stats = pl.pallas_call(
        _pass1_kernel,
        out_shape=jax.ShapeDtypeStruct((N, num_t, C_OUT, 2), jnp.float32),
        grid=(N, num_t),
        in_specs=[
            pl.BlockSpec((None, K_PATCH, tile_hw), lambda n, t: (n, 0, t)),
            pl.BlockSpec((C_MAIN, K_PATCH), lambda n, t: (0, 0)),
        ],
        out_specs=pl.BlockSpec((None, None, C_OUT, 2),
                               lambda n, t: (n, t, 0, 0)),
        compiler_params=pltpu.CompilerParams(
            dimension_semantics=("parallel", "parallel")),
    )(patches, wmat)

    # ---- finish global (biased) BN statistics; fold affine + rsqrt once ----
    M = N * HW                   # zero-padded lanes contribute 0 to both sums
    ssum = jnp.sum(stats[..., 0], axis=(0, 1))                       # (16,)
    ssq = jnp.sum(stats[..., 1], axis=(0, 1))                        # (16,)
    mean = ssum / M
    var = jnp.maximum(ssq / M - mean * mean, 0.0)                    # biased
    scale = bn_gamma.astype(jnp.float32) * lax.rsqrt(var + EPS)
    shift = bn_beta.astype(jnp.float32) - mean * scale
    params = jnp.stack([scale, shift, prelu_w.astype(jnp.float32)], axis=1)

    # ---- pass 2: recompute conv+pool, folded BN + PReLU, single store ------
    out = pl.pallas_call(
        _pass2_kernel,
        out_shape=jax.ShapeDtypeStruct((N, C_OUT, hw_pad), jnp.float32),
        grid=(N, num_t),
        in_specs=[
            pl.BlockSpec((None, K_PATCH, tile_hw), lambda n, t: (n, 0, t)),
            pl.BlockSpec((C_MAIN, K_PATCH), lambda n, t: (0, 0)),
            pl.BlockSpec((C_OUT, 3), lambda n, t: (0, 0)),
        ],
        out_specs=pl.BlockSpec((None, C_OUT, tile_hw), lambda n, t: (n, 0, t)),
        compiler_params=pltpu.CompilerParams(
            dimension_semantics=("parallel", "parallel")),
    )(patches, wmat, params)

    if hw_pad != HW:
        out = out[:, :, :HW]
    # Output is already NCHW: just un-flatten the spatial axis.
    return out.reshape(N, C_OUT, Ho, Wo)


def _reference(x_nchw, conv_w, bn_gamma, bn_beta, prelu_w):
    """Pure-JAX f32 reference mirroring the PyTorch forward (training BN)."""
    main = lax.conv_general_dilated(
        x_nchw, conv_w, window_strides=(2, 2), padding=((1, 1), (1, 1)),
        dimension_numbers=("NCHW", "OIHW", "NCHW"))
    ext = lax.reduce_window(x_nchw, -jnp.inf, lax.max,
                            (1, 1, 2, 2), (1, 1, 2, 2), "VALID")
    out = jnp.concatenate([main, ext], axis=1)
    mean = jnp.mean(out, axis=(0, 2, 3), keepdims=True)
    var = jnp.mean(jnp.square(out - mean), axis=(0, 2, 3), keepdims=True)
    y = (out - mean) * lax.rsqrt(var + EPS)
    y = y * bn_gamma[None, :, None, None] + bn_beta[None, :, None, None]
    slope = prelu_w[None, :, None, None]
    return jnp.where(y >= 0.0, y, y * slope)


if __name__ == "__main__":
    key = jax.random.PRNGKey(0)
    kx, kw = jax.random.split(key)

    # Small shapes consistent with the module (Conv2d expects 3 input channels).
    N, H, W = 2, 16, 16
    x = jax.random.normal(kx, (N, C_IN, H, W), dtype=jnp.float32)

    conv_w = 0.1 * jax.random.normal(kw, (C_MAIN, C_IN, 3, 3), dtype=jnp.float32)
    bn_gamma = jnp.ones((C_OUT,), jnp.float32)       # BatchNorm2d weight init
    bn_beta = jnp.zeros((C_OUT,), jnp.float32)       # BatchNorm2d bias init
    prelu_w = jnp.full((C_OUT,), 0.25, jnp.float32)  # PReLU default slope

    out = jax.block_until_ready(
        initial_block(x, conv_w, bn_gamma, bn_beta, prelu_w))

    ref = _reference(x, conv_w, bn_gamma, bn_beta, prelu_w)
    assert out.shape == (N, C_OUT, H // 2, W // 2), out.shape
    # bf16 patch storage bounds the error at ~|x| * 2^-9 / sigma (~1e-2 here);
    # setting PATCH_DTYPE = jnp.float32 recovers <2e-3 agreement.
    tol = 2e-2 if PATCH_DTYPE == jnp.bfloat16 else 2e-3
    assert jnp.allclose(out, ref, atol=tol, rtol=tol), float(
        jnp.max(jnp.abs(out - ref)))

    print("KERNEL_OK")
</pallas_src>

<mosaic_0001>
module attributes {stable_mosaic.version = 11 : i64} {
  func.func @_pass1_kernel(%arg0: i32, %arg1: i32, %arg2: memref<1x27x64xbf16, #tpu.memory_space<vmem>>, %arg3: memref<13x27xbf16, #tpu.memory_space<vmem>>, %arg4: memref<1x1x16x2xf32, #tpu.memory_space<vmem>>) attributes {dimension_semantics = [#tpu.dimension_semantics<parallel>, #tpu.dimension_semantics<parallel>], iteration_bounds = array<i64: 2, 1>, scalar_prefetch = 0 : i64, scratch_operands = 0 : i64, tpu.core_type = #tpu.core_type<tc>, window_params = [{transform_indices = @transform_0, window_bounds = array<i64: 1, 27, 64>}, {pipeline_mode = #tpu.pipeline_mode<synchronous>, transform_indices = @transform_1, window_bounds = array<i64: 13, 27>}, {transform_indices = @transform_2, window_bounds = array<i64: 1, 1, 16, 2>}]} {
    %c0 = arith.constant 0 : index
    %c0_0 = arith.constant 0 : index
    %0 = vector.load %arg3[%c0, %c0_0] : memref<13x27xbf16, #tpu.memory_space<vmem>>, vector<13x27xbf16>
    %c0_1 = arith.constant 0 : index
    %c0_2 = arith.constant 0 : index
    %c0_3 = arith.constant 0 : index
    %1 = vector.load %arg2[%c0_1, %c0_2, %c0_3] : memref<1x27x64xbf16, #tpu.memory_space<vmem>>, vector<1x27x64xbf16>
    %2 = vector.shape_cast %1 : vector<1x27x64xbf16> to vector<27x64xbf16>
    %cst = arith.constant dense<0.000000e+00> : vector<13x64xf32>
    %3 = tpu.matmul %0, %2, %cst {dimension_numbers = #tpu.dot_dimension_numbers<[1], [0], [0], [1], [0, 0, 1, 1], [], []>} : vector<13x27xbf16>, vector<27x64xbf16>, vector<13x64xf32> -> vector<13x64xf32>
    %c0_4 = arith.constant 0 : index
    %c12 = arith.constant 12 : index
    %c0_5 = arith.constant 0 : index
    %4 = vector.load %arg2[%c0_4, %c12, %c0_5] : memref<1x27x64xbf16, #tpu.memory_space<vmem>>, vector<1x3x64xbf16>
    %5 = vector.shape_cast %4 : vector<1x3x64xbf16> to vector<3x64xbf16>
    %6 = arith.extf %5 : vector<3x64xbf16> to vector<3x64xf32>
    %c0_6 = arith.constant 0 : index
    %c15 = arith.constant 15 : index
    %c0_7 = arith.constant 0 : index
    %7 = vector.load %arg2[%c0_6, %c15, %c0_7] : memref<1x27x64xbf16, #tpu.memory_space<vmem>>, vector<1x3x64xbf16>
    %8 = vector.shape_cast %7 : vector<1x3x64xbf16> to vector<3x64xbf16>
    %9 = arith.extf %8 : vector<3x64xbf16> to vector<3x64xf32>
    %c0_8 = arith.constant 0 : index
    %c21 = arith.constant 21 : index
    %c0_9 = arith.constant 0 : index
    %10 = vector.load %arg2[%c0_8, %c21, %c0_9] : memref<1x27x64xbf16, #tpu.memory_space<vmem>>, vector<1x3x64xbf16>
    %11 = vector.shape_cast %10 : vector<1x3x64xbf16> to vector<3x64xbf16>
    %12 = arith.extf %11 : vector<3x64xbf16> to vector<3x64xf32>
    %c0_10 = arith.constant 0 : index
    %c24 = arith.constant 24 : index
    %c0_11 = arith.constant 0 : index
    %13 = vector.load %arg2[%c0_10, %c24, %c0_11] : memref<1x27x64xbf16, #tpu.memory_space<vmem>>, vector<1x3x64xbf16>
    %14 = vector.shape_cast %13 : vector<1x3x64xbf16> to vector<3x64xbf16>
    %15 = arith.extf %14 : vector<3x64xbf16> to vector<3x64xf32>
    %16 = arith.maximumf %6, %9 : vector<3x64xf32>
    %17 = arith.maximumf %12, %15 : vector<3x64xf32>
    %18 = arith.maximumf %16, %17 : vector<3x64xf32>
    %19 = tpu.concatenate %3, %18 in 0 : vector<13x64xf32>, vector<3x64xf32> -> vector<16x64xf32>
    %cst_12 = arith.constant dense<0.000000e+00> : vector<16xf32>
    %20 = vector.multi_reduction <add>, %19, %cst_12 [1] : vector<16x64xf32> to vector<16xf32>
    %21 = vector.shape_cast %20 : vector<16xf32> to vector<16x1xf32>
    %22 = arith.mulf %19, %19 : vector<16x64xf32>
    %cst_13 = arith.constant dense<0.000000e+00> : vector<16xf32>
    %23 = vector.multi_reduction <add>, %22, %cst_13 [1] : vector<16x64xf32> to vector<16xf32>
    %24 = vector.shape_cast %23 : vector<16xf32> to vector<16x1xf32>
    %25 = tpu.concatenate %21, %24 in 1 : vector<16x1xf32>, vector<16x1xf32> -> vector<16x2xf32>
    %c0_14 = arith.constant 0 : index
    %c0_15 = arith.constant 0 : index
    %c0_16 = arith.constant 0 : index
    %c0_17 = arith.constant 0 : index
    %26 = vector.load %arg4[%c0_14, %c0_15, %c0_16, %c0_17] : memref<1x1x16x2xf32, #tpu.memory_space<vmem>>, vector<1x1x16x2xf32>
    %27 = vector.shape_cast %26 : vector<1x1x16x2xf32> to vector<16x2xf32>
    %28 = vector.shape_cast %25 : vector<16x2xf32> to vector<1x1x16x2xf32>
    tpu.vector_store %arg4[%c0_14, %c0_15, %c0_16, %c0_17], %28 {strides = array<i32>} : memref<1x1x16x2xf32, #tpu.memory_space<vmem>>, vector<1x1x16x2xf32>,
    return
  }
  func.func @transform_0(%arg0: i32, %arg1: i32) -> (i32, i32, i32) {
    %c0_i32 = arith.constant 0 : i32
    %c0_i32_0 = arith.constant 0 : i32
    return %arg0, %c0_i32, %arg1 : i32, i32, i32
  }
  func.func @transform_1(%arg0: i32, %arg1: i32) -> (i32, i32) {
    %c0_i32 = arith.constant 0 : i32
    %c0_i32_0 = arith.constant 0 : i32
    %c0_i32_1 = arith.constant 0 : i32
    return %c0_i32, %c0_i32_0 : i32, i32
  }
  func.func @transform_2(%arg0: i32, %arg1: i32) -> (i32, i32, i32, i32) {
    %c0_i32 = arith.constant 0 : i32
    %c0_i32_0 = arith.constant 0 : i32
    %c0_i32_1 = arith.constant 0 : i32
    return %arg0, %arg1, %c0_i32, %c0_i32_0 : i32, i32, i32, i32
  }
}

module attributes {stable_mosaic.version = 11 : i64} {
  func.func @_pass2_kernel(%arg0: i32, %arg1: i32, %arg2: memref<1x27x64xbf16, #tpu.memory_space<vmem>>, %arg3: memref<13x27xbf16, #tpu.memory_space<vmem>>, %arg4: memref<16x3xf32, #tpu.memory_space<vmem>>, %arg5: memref<1x16x64xf32, #tpu.memory_space<vmem>>) attributes {dimension_semantics = [#tpu.dimension_semantics<parallel>, #tpu.dimension_semantics<parallel>], iteration_bounds = array<i64: 2, 1>, scalar_prefetch = 0 : i64, scratch_operands = 0 : i64, tpu.core_type = #tpu.core_type<tc>, window_params = [{transform_indices = @transform_0, window_bounds = array<i64: 1, 27, 64>}, {pipeline_mode = #tpu.pipeline_mode<synchronous>, transform_indices = @transform_1, window_bounds = array<i64: 13, 27>}, {pipeline_mode = #tpu.pipeline_mode<synchronous>, transform_indices = @transform_2, window_bounds = array<i64: 16, 3>}, {transform_indices = @transform_3, window_bounds = array<i64: 1, 16, 64>}]} {
    %c0 = arith.constant 0 : index
    %c0_0 = arith.constant 0 : index
    %0 = vector.load %arg3[%c0, %c0_0] : memref<13x27xbf16, #tpu.memory_space<vmem>>, vector<13x27xbf16>
    %c0_1 = arith.constant 0 : index
    %c0_2 = arith.constant 0 : index
    %c0_3 = arith.constant 0 : index
    %1 = vector.load %arg2[%c0_1, %c0_2, %c0_3] : memref<1x27x64xbf16, #tpu.memory_space<vmem>>, vector<1x27x64xbf16>
    %2 = vector.shape_cast %1 : vector<1x27x64xbf16> to vector<27x64xbf16>
    %cst = arith.constant dense<0.000000e+00> : vector<13x64xf32>
    %3 = tpu.matmul %0, %2, %cst {dimension_numbers = #tpu.dot_dimension_numbers<[1], [0], [0], [1], [0, 0, 1, 1], [], []>} : vector<13x27xbf16>, vector<27x64xbf16>, vector<13x64xf32> -> vector<13x64xf32>
    %c0_4 = arith.constant 0 : index
    %c12 = arith.constant 12 : index
    %c0_5 = arith.constant 0 : index
    %4 = vector.load %arg2[%c0_4, %c12, %c0_5] : memref<1x27x64xbf16, #tpu.memory_space<vmem>>, vector<1x3x64xbf16>
    %5 = vector.shape_cast %4 : vector<1x3x64xbf16> to vector<3x64xbf16>
    %6 = arith.extf %5 : vector<3x64xbf16> to vector<3x64xf32>
    %c0_6 = arith.constant 0 : index
    %c15 = arith.constant 15 : index
    %c0_7 = arith.constant 0 : index
    %7 = vector.load %arg2[%c0_6, %c15, %c0_7] : memref<1x27x64xbf16, #tpu.memory_space<vmem>>, vector<1x3x64xbf16>
    %8 = vector.shape_cast %7 : vector<1x3x64xbf16> to vector<3x64xbf16>
    %9 = arith.extf %8 : vector<3x64xbf16> to vector<3x64xf32>
    %c0_8 = arith.constant 0 : index
    %c21 = arith.constant 21 : index
    %c0_9 = arith.constant 0 : index
    %10 = vector.load %arg2[%c0_8, %c21, %c0_9] : memref<1x27x64xbf16, #tpu.memory_space<vmem>>, vector<1x3x64xbf16>
    %11 = vector.shape_cast %10 : vector<1x3x64xbf16> to vector<3x64xbf16>
    %12 = arith.extf %11 : vector<3x64xbf16> to vector<3x64xf32>
    %c0_10 = arith.constant 0 : index
    %c24 = arith.constant 24 : index
    %c0_11 = arith.constant 0 : index
    %13 = vector.load %arg2[%c0_10, %c24, %c0_11] : memref<1x27x64xbf16, #tpu.memory_space<vmem>>, vector<1x3x64xbf16>
    %14 = vector.shape_cast %13 : vector<1x3x64xbf16> to vector<3x64xbf16>
    %15 = arith.extf %14 : vector<3x64xbf16> to vector<3x64xf32>
    %16 = arith.maximumf %6, %9 : vector<3x64xf32>
    %17 = arith.maximumf %12, %15 : vector<3x64xf32>
    %18 = arith.maximumf %16, %17 : vector<3x64xf32>
    %19 = tpu.concatenate %3, %18 in 0 : vector<13x64xf32>, vector<3x64xf32> -> vector<16x64xf32>
    %c0_12 = arith.constant 0 : index
    %c0_13 = arith.constant 0 : index
    %20 = vector.load %arg4[%c0_12, %c0_13] : memref<16x3xf32, #tpu.memory_space<vmem>>, vector<16x1xf32>
    %c0_14 = arith.constant 0 : index
    %c1 = arith.constant 1 : index
    %21 = vector.load %arg4[%c0_14, %c1] : memref<16x3xf32, #tpu.memory_space<vmem>>, vector<16x1xf32>
    %c0_15 = arith.constant 0 : index
    %c2 = arith.constant 2 : index
    %22 = vector.load %arg4[%c0_15, %c2] : memref<16x3xf32, #tpu.memory_space<vmem>>, vector<16x1xf32>
    %23 = vector.broadcast %20 : vector<16x1xf32> to vector<16x64xf32>
    %24 = arith.mulf %19, %23 : vector<16x64xf32>
    %25 = vector.broadcast %21 : vector<16x1xf32> to vector<16x64xf32>
    %26 = arith.addf %24, %25 : vector<16x64xf32>
    %cst_16 = arith.constant 0.000000e+00 : f32
    %27 = vector.broadcast %cst_16 : f32 to vector<16x64xf32>
    %28 = arith.cmpf oge, %26, %27 : vector<16x64xf32>
    %29 = vector.broadcast %22 : vector<16x1xf32> to vector<16x64xf32>
    %30 = arith.mulf %26, %29 : vector<16x64xf32>
    %31 = arith.select %28, %26, %30 : vector<16x64xi1>, vector<16x64xf32>
    %c0_17 = arith.constant 0 : index
    %c0_18 = arith.constant 0 : index
    %c0_19 = arith.constant 0 : index
    %32 = vector.load %arg5[%c0_17, %c0_18, %c0_19] : memref<1x16x64xf32, #tpu.memory_space<vmem>>, vector<1x16x64xf32>
    %33 = vector.shape_cast %32 : vector<1x16x64xf32> to vector<16x64xf32>
    %34 = vector.shape_cast %31 : vector<16x64xf32> to vector<1x16x64xf32>
    tpu.vector_store %arg5[%c0_17, %c0_18, %c0_19], %34 {strides = array<i32>} : memref<1x16x64xf32, #tpu.memory_space<vmem>>, vector<1x16x64xf32>,
    return
  }
  func.func @transform_0(%arg0: i32, %arg1: i32) -> (i32, i32, i32) {
    %c0_i32 = arith.constant 0 : i32
    %c0_i32_0 = arith.constant 0 : i32
    return %arg0, %c0_i32, %arg1 : i32, i32, i32
  }
  func.func @transform_1(%arg0: i32, %arg1: i32) -> (i32, i32) {
    %c0_i32 = arith.constant 0 : i32
    %c0_i32_0 = arith.constant 0 : i32
    %c0_i32_1 = arith.constant 0 : i32
    return %c0_i32, %c0_i32_0 : i32, i32
  }
  func.func @transform_2(%arg0: i32, %arg1: i32) -> (i32, i32) {
    %c0_i32 = arith.constant 0 : i32
    %c0_i32_0 = arith.constant 0 : i32
    %c0_i32_1 = arith.constant 0 : i32
    return %c0_i32, %c0_i32_0 : i32, i32
  }
  func.func @transform_3(%arg0: i32, %arg1: i32) -> (i32, i32, i32) {
    %c0_i32 = arith.constant 0 : i32
    %c0_i32_0 = arith.constant 0 : i32
    return %arg0, %c0_i32, %arg1 : i32, i32, i32
  }
}

</mosaic_0001>

<bundles_post_ra>
// kernel: initial_block.2
= control target key start
LH: loop header
LB: loop body
LE: loop exit
PB: predicated region body
PF: predicated region fallthrough
CT: control target
= control target key end

     0   :  { %s490_s9 = smov 0   ;;  %s492_s10 = smov 0   ;;  %s536_s0 = inlined_call_operand.vmem [shape: bf16[2,27,64], index: 0, kind: input, shape index: {}]   ;;  %s537_s1 = inlined_call_operand.vmem [shape: bf16[13,27], index: 1, kind: input, shape index: {}]   ;;  %s538_s2 = inlined_call_operand.vmem [shape: f32[2,1,16,2], index: 2, kind: output, shape index: {}]  }
   0x1   :  { %s494_s11 = smov 0  }
   0x2 LB: > { %s24_s12 = sadd.s32 1, %s466_s10  ;;  %p394_p0 = scmp.ge.s32.totalorder %s470_s11, 1  ;;  %s470_s11 = sphi %s494_s11, %s12_s11   ;;  %s466_s10 = sphi %s492_s10, %s540_s10   ;;  %s462_s9 = sphi %s490_s9, %s539_s9  }
   0x3   : > { %p26_p1 = scmp.ge.s32.totalorder %s24_s12, 2  ;;  %p131_p2 = scmp.lt.s32.totalorder %s470_s11, 3 }
   0x5   : > { %s542_s12 = smov (%p26_p1, %s24_s12), 0  ;;  %p132_p3 = pnand %p394_p0, %p131_p2 }
   0x6   : > { %p160_p4 = scmp.lt.s32.totalorder (!%p132_p3), %s462_s9, 1  ;;  %vm204_vm0 = vcmask (!%p132_p3), 1044480   ;;  %v472_v0 = vmov (!%p132_p3), 0.0   ;;  %vm473_vm1 = vmmov (!%p132_p3), 0   ;;  %vm205_vm2 = vcmask (!%p132_p3), 1045504  }
   0x7   : > { %135 = sbr.rel (%p132_p3) target bundleno = 388 (0x184), region = 28  ;;  %410 = vmatprep.subr.bf16.mxu0 (!%p132_p3), %v472_v0  ;;  %414 = vmatprep.mubr.msk.bf16.mxu0 (!%p132_p3), %vm473_vm1, %v472_v0  ;;  %v474_v1 = vmov (!%p132_p3), 65535   ;;  %v447_v9 = vld [vmem:[%s537_s1] sm:$0x7f] (!%p132_p3)   ;;  %vm200_vm3 = vcmask (!%p132_p3), 220160   ;;  %vm280_vm4 = vcmask (!%p132_p3), 523264  }
   0x8   : > { %v206_v2 = vsel (!%p132_p3), %vm204_vm0, 4294967295, %v474_v1  ;;  %vm295_vm5 = vcmask (!%p132_p3), 7168   ;;  %vm298_vm6 = vcmask (!%p132_p3), 15360  }
   0x9   : > { %v207_v6 = vsel (!%p132_p3), %vm205_vm2, %v206_v2, 0 }
   0xe   : > { %s544_s9 = smov (!%p160_p4, %s462_s9), 1 }
   0xf   : > { %s405_s13 = sshll.u32 %s544_s9, 4 }
  0x10   : > { %s167_s16 = scalar_lea.vmem %s536_s0, %s405_s13  ;;  %s176_s21 = scalar_lea.vmem %s538_s2, %s405_s13 }
  0x11   : > { %v445_v3 = vld [vmem:[%s167_s16] sm:$0xff]   ;;  %v182_v4 = vld [vmem:[%s167_s16 + $0x8] sm:$0xf]  ;;  %v183_v5 = vld [vmem:[%s167_s16 + $0xc] sm:$0x3] }
  0x12   : > { %411 = vmatpush3.bf16.msra.mxu0 %v445_v3  ;;  %v401_v7 = vcombine.low %v182_v4, %v183_v5  ;;  %v254_v10 = vld [vmem:[%s167_s16 + $0x4] sm:$0x8]  ;;  %v255_v11 = vld [vmem:[%s167_s16 + $0x8] sm:$0x1]  ;;  %v260_v12 = vunpack.c.l.bf16 %v183_v5  ;;  %v258_v15 = vld [vmem:[%s167_s16 + $0x8] sm:$0xc] }
  0x13   : > { %412 = vmatprep.subr.bf16.mxu0 %v472_v0  ;;  %v256_v13 = vunpack.c.l.bf16 %v254_v10  ;;  %v257_v14 = vunpack.c.l.bf16 %v255_v11  ;;  %v259_v17 = vunpack.c.l.bf16 %v258_v15  ;;  %v252_v18 = vld [vmem:[%s167_s16 + $0x4] sm:$0xc] }
  0x14   : > { %v209_v8 = vand.u32 %v401_v7, %v207_v6  ;;  %v269_v16 = vrot.slane %v260_v12, 3  ;;  %v253_v21 = vunpack.c.l.bf16 %v252_v18 }
  0x15   : > { %v263_v19 = vrot.slane %v256_v13, 3  ;;  %v264_v20 = vrot.slane %v257_v14, 3 }
  0x16   : > { %413 = vmatpush3.bf16.msra.mxu0 %v209_v8  ;;  %v271_v22 = vmax.f32 %v259_v17, %v269_v16 }
  0x17   : > { %v265_v23 = vsel %vm204_vm0, %v263_v19, %v264_v20 }
  0x18   : > { %v267_v24 = vmax.f32 %v253_v21, %v265_v23  ;;  %v273_v25 = vrot.slane %v271_v22, 1 }
  0x19   : > { %415 = vmatmul.mubr.msk.bf16.vlgmr.msra.gmra.mrb[0].mxu0 %vm200_vm3, %v447_v9 }
  0x1a   : > { %v275_v26 = vmax.f32 %v267_v24, %v273_v25 }
  0x1c   : > { %v277_v27 = vrot.slane %v275_v26, 7 }
  0xec   : > { %v245_v28 = vpop.f32.mrb[0].mxu0 }
  0xed   : > { %v416_v29 = vpop.f32.mrb[1].mxu0  ;;  %v281_v30 = vsel %vm280_vm4, %v245_v28, 0.0  ;;  %v287_v31 = vmul.f32 %v245_v28, %v245_v28 }
  0xee   : > { %282 = vadd.xlane.f32.xlu0 %v281_v30  ;;  %v248_v32 = vpop.f32.mrb[2].mxu0 }
  0xef   : > { %v417_v33 = vpop.f32.mrb[3].mxu0  ;;  %v289_v34 = vsel %vm280_vm4, %v287_v31, 0.0  ;;  %v279_v35 = vsel %vm204_vm0, %v248_v32, %v277_v27 }
  0xf0   : > { %290 = vadd.xlane.f32.xlu1 %v289_v34  ;;  %v284_v36 = vsel %vm280_vm4, %v279_v35, 0.0  ;;  %v288_v37 = vmul.f32 %v279_v35, %v279_v35 }
  0xf2   : > { %285 = vadd.xlane.f32.xlu0 %v284_v36  ;;  %v292_v38 = vsel %vm280_vm4, %v288_v37, 0.0 }
  0xf4   : > { %293 = vadd.xlane.f32.xlu1 %v292_v38 }
 0x17b   : > { %v283_v39 = vpop.xlane.xlu0 %282 }
 0x17d   : > { %v291_v40 = vpop.xlane.xlu1 %290 }
 0x17e   : > { %v296_v41 = vsel %vm295_vm5, %v283_v39, %v291_v40 }
 0x17f   : > { %299 = vst.msk [vmem:[%s176_s21] sm:$0xff] %vm298_vm6, %v296_v41  ;;  %v286_v42 = vpop.xlane.xlu0 %285 }
 0x181   : > { %v294_v43 = vpop.xlane.xlu1 %293 }
 0x182   : > { %v297_v44 = vsel %vm295_vm5, %v286_v42, %v294_v43 }
 0x183   : > { %300 = vst.msk [vmem:[%s176_s21 + $0x8] sm:$0xff] %vm298_vm6, %v297_v44 }
 0x184 PF: > { %s12_s11 = sadd.s32 1, %s470_s11   ;;  %s539_s9 = smov %s466_s10 }
 0x185   : > { %p9_p5 = scmp.ge.s32.totalorder %s12_s11, 4   ;;  %s540_s10 = smov %s542_s12 }
 0x187   :  { %11 = sbr.rel (!%p9_p5) target bundleno = 2 (0x2), region = 58 }

// kernel: initial_block.3
= control target key start
LH: loop header
LB: loop body
LE: loop exit
PB: predicated region body
PF: predicated region fallthrough
CT: control target
= control target key end

     0   :  { %s544_s12 = smov 0   ;;  %s546_s13 = smov 0   ;;  %s596_s0 = inlined_call_operand.vmem [shape: bf16[2,27,64], index: 0, kind: input, shape index: {}]   ;;  %s597_s1 = inlined_call_operand.vmem [shape: bf16[13,27], index: 1, kind: input, shape index: {}]   ;;  %s598_s2 = inlined_call_operand.vmem [shape: f32[16,3], index: 2, kind: input, shape index: {}]   ;;  %s599_s3 = inlined_call_operand.vmem [shape: f32[2,16,64], index: 3, kind: output, shape index: {}]  }
   0x1   :  { %s548_s14 = smov 0  }
   0x2 LB: > { %s25_s15 = sadd.s32 1, %s512_s13  ;;  %p433_p0 = scmp.ge.s32.totalorder %s516_s14, 1  ;;  %s516_s14 = sphi %s548_s14, %s13_s14   ;;  %s512_s13 = sphi %s546_s13, %s601_s13   ;;  %s508_s12 = sphi %s544_s12, %s600_s12  }
   0x3   : > { %p27_p1 = scmp.ge.s32.totalorder %s25_s15, 2  ;;  %p156_p2 = scmp.lt.s32.totalorder %s516_s14, 3 }
   0x5   : > { %s603_s15 = smov (%p27_p1, %s25_s15), 0  ;;  %p157_p3 = pnand %p433_p0, %p156_p2 }
   0x6   : > { %p186_p4 = scmp.lt.s32.totalorder (!%p157_p3), %s508_s12, 1  ;;  %vm229_vm0 = vcmask (!%p157_p3), 1044480   ;;  %v518_v0 = vmov (!%p157_p3), 0.0   ;;  %v305_v1 = vld [vmem:[%s598_s2] sm:$0xff] (!%p157_p3)  ;;  %vm519_vm1 = vmmov (!%p157_p3), 0   ;;  %v520_v2 = vmov (!%p157_p3), 1  }
   0x7   : > { %160 = sbr.rel (%p157_p3) target bundleno = 248 (0xf8), region = 32  ;;  %449 = vmatprep.subr.bf16.mxu0 (!%p157_p3), %v518_v0  ;;  %453 = vmatprep.mubr.msk.bf16.mxu0 (!%p157_p3), %vm519_vm1, %v518_v0  ;;  %vm230_vm2 = vcmask (!%p157_p3), 1045504   ;;  %v521_v3 = vmov (!%p157_p3), 65535   ;;  %v522_v5 = vmov (!%p157_p3), 0   ;;  %v306_v6 = vld [vmem:[%s598_s2 + $0x8] sm:$0xff] (!%p157_p3)  ;;  %vm225_vm3 = vcmask (!%p157_p3), 220160  }
   0x8   : > { %488 = vset.pattern.permute.xlu1 (!%p157_p3), %v520_v2  ;;  %v231_v4 = vsel (!%p157_p3), %vm229_vm0, 4294967295, %v521_v3  ;;  %487 = vset.pattern.permute.xlu0 (!%p157_p3), %v522_v5  ;;  %v493_v13 = vld [vmem:[%s597_s1] sm:$0x7f] (!%p157_p3)   ;;  %v523_v14 = vmov (!%p157_p3), 2   ;;  %vm343_vm5 = vcmask (!%p157_p3), 523264  }
   0x9   : > { %320 = vperm.xlu1 (!%p157_p3), %488, %v305_v1   ;;  %309 = vperm.xlu0 (!%p157_p3), %487, %v305_v1   ;;  %v232_v10 = vsel (!%p157_p3), %vm230_vm2, %v231_v4, 0 }
   0xd   : > { %324 = vperm.xlu1 (!%p157_p3), %488, %v306_v6   ;;  %314 = vperm.xlu0 (!%p157_p3), %487, %v306_v6  }
   0xe   : > { %s605_s12 = smov (!%p186_p4, %s508_s12), 1 }
   0xf   : > { %s444_s18 = sshll.u32 %s605_s12, 4 }
  0x10   : > { %s193_s21 = scalar_lea.vmem %s596_s0, %s444_s18  ;;  %s201_s28 = scalar_lea.vmem %s599_s3, %s444_s18 }
  0x11   : > { %v491_v7 = vld [vmem:[%s193_s21] sm:$0xff]   ;;  %v207_v8 = vld [vmem:[%s193_s21 + $0x8] sm:$0xf]  ;;  %v208_v9 = vld [vmem:[%s193_s21 + $0xc] sm:$0x3]  ;;  %490 = vset.pattern.permute.xlu1 %v523_v14  ;;  %489 = vset.pattern.permute.xlu0 %v523_v14 }
  0x12   : > { %450 = vmatpush3.bf16.msra.mxu0 %v491_v7  ;;  %v440_v11 = vcombine.low %v207_v8, %v208_v9  ;;  %336 = vperm.xlu1 %490, %v306_v6   ;;  %v279_v15 = vld [vmem:[%s193_s21 + $0x4] sm:$0x8]  ;;  %v280_v16 = vld [vmem:[%s193_s21 + $0x8] sm:$0x1]  ;;  %v285_v17 = vunpack.c.l.bf16 %v208_v9  ;;  %v283_v20 = vld [vmem:[%s193_s21 + $0x8] sm:$0xc] }
  0x13   : > { %451 = vmatprep.subr.bf16.mxu0 %v518_v0  ;;  %332 = vperm.xlu0 %489, %v305_v1   ;;  %v281_v18 = vunpack.c.l.bf16 %v279_v15  ;;  %v282_v19 = vunpack.c.l.bf16 %v280_v16  ;;  %v284_v22 = vunpack.c.l.bf16 %v283_v20  ;;  %v277_v23 = vld [vmem:[%s193_s21 + $0x4] sm:$0xc] }
  0x14   : > { %v234_v12 = vand.u32 %v440_v11, %v232_v10  ;;  %v294_v21 = vrot.slane %v285_v17, 3  ;;  %v278_v26 = vunpack.c.l.bf16 %v277_v23 }
  0x15   : > { %v288_v24 = vrot.slane %v281_v18, 3  ;;  %v289_v25 = vrot.slane %v282_v19, 3 }
  0x16   : > { %452 = vmatpush3.bf16.msra.mxu0 %v234_v12  ;;  %v296_v27 = vmax.f32 %v284_v22, %v294_v21 }
  0x17   : > { %v290_v28 = vsel %vm229_vm0, %v288_v24, %v289_v25 }
  0x18   : > { %v292_v29 = vmax.f32 %v278_v26, %v290_v28  ;;  %v298_v30 = vrot.slane %v296_v27, 1 }
  0x19   : > { %454 = vmatmul.mubr.msk.bf16.vlgmr.msra.gmra.mrb[0].mxu0 %vm225_vm3, %v493_v13 }
  0x1a   : > { %v300_v33 = vmax.f32 %v292_v29, %v298_v30 }
  0x1c   : > { %v302_v35 = vrot.slane %v300_v33, 7 }
  0x88   : > { %v310_v31 = vpop.permute.xlu0 %309  ;;  %v321_v32 = vpop.permute.xlu1 %320 }
  0x8c   : > { %v315_v34 = vpop.permute.xlu0 %314  ;;  %v325_v37 = vpop.permute.xlu1 %324 }
  0x91   : > { %v337_v47 = vpop.permute.xlu1 %336 }
  0x92   : > { %v333_v41 = vpop.permute.xlu0 %332 }
  0xec   : > { %v270_v36 = vpop.f32.mrb[0].mxu0 }
  0xed   : > { %v317_v38 = vmul.f32 %v310_v31, %v270_v36  ;;  %v455_v39 = vpop.f32.mrb[1].mxu0 }
  0xee   : > { %v273_v40 = vpop.f32.mrb[2].mxu0 }
  0xef   : > { %v327_v42 = vadd.f32 %v321_v32, %v317_v38  ;;  %v304_v43 = vsel %vm229_vm0, %v273_v40, %v302_v35  ;;  %v456_v44 = vpop.f32.mrb[3].mxu0 }
  0xf0   : > { %v318_v45 = vmul.f32 %v315_v34, %v304_v43 }
  0xf1   : > { %vm329_vm4 = vcmp.ge.f32.partialorder %v327_v42, 0.0  ;;  %v339_v46 = vmul.f32 %v333_v41, %v327_v42 }
  0xf2   : > { %v328_v48 = vadd.f32 %v325_v37, %v318_v45 }
  0xf3   : > { %v341_v49 = vsel %vm329_vm4, %v327_v42, %v339_v46 }
  0xf4   : > { %344 = vst.msk [vmem:[%s201_s28] sm:$0xff] %vm343_vm5, %v341_v49  ;;  %vm330_vm6 = vcmp.ge.f32.partialorder %v328_v48, 0.0  ;;  %v340_v50 = vmul.f32 %v337_v47, %v328_v48 }
  0xf6   : > { %v342_v51 = vsel %vm330_vm6, %v328_v48, %v340_v50 }
  0xf7   : > { %345 = vst.msk [vmem:[%s201_s28 + $0x8] sm:$0xff] %vm343_vm5, %v342_v51 }
  0xf8 PF: > { %s13_s14 = sadd.s32 1, %s516_s14   ;;  %s600_s12 = smov %s512_s13 }
  0xf9   : > { %p10_p5 = scmp.ge.s32.totalorder %s13_s14, 4   ;;  %s601_s13 = smov %s603_s15 }
  0xfb   :  { %12 = sbr.rel (!%p10_p5) target bundleno = 2 (0x2), region = 62 }

</bundles_post_ra>
